<compile_context>
chip_gen: v5e
topology: v5e:2x2
jax: 0.10.0
libtpu: 0.0.40
codegen_flags: <defaults>
</compile_context>

<pallas_src>
import jax
import jax.numpy as jnp
from jax.experimental import pallas as pl
from jax.experimental.pallas import tpu as pltpu

RELU_SLOPE = 0.2  # hparams.encoder_relu_slope > 0 -> LeakyReLU


def _leaky(x):
    return jnp.where(x > 0, x, RELU_SLOPE * x)


# ---------------------------------------------------------------------------
# Fused kernel: pointwise conv stack (one matmul per layer, rows = points,
# lanes = channels) + running max over the (tiled) points axis + FC head +
# reparameterize.  Grid = (batch tiles [parallel], L tiles [arbitrary]).
# ---------------------------------------------------------------------------
def _encoder_kernel(x_ref, w1_ref, b1_ref, w2_ref, b2_ref, w3_ref, b3_ref,
                    wfc_ref, bfc_ref, wh_ref, bh_ref, eps_ref,
                    out_ref, max_sc):
    bt, lt, c_in = x_ref.shape
    c3 = w3_ref.shape[1]
    l_idx = pl.program_id(1)

    @pl.when(l_idx == 0)
    def _():
        max_sc[...] = jnp.full_like(max_sc, -jnp.inf)

    # ---- conv stack: (bt*lt, C_in) @ (C_in, C1) @ ... , f32 accumulation ----
    h = x_ref[...].reshape(bt * lt, c_in)                       # conv_dtype
    h = _leaky(jnp.dot(h, w1_ref[...],
                       preferred_element_type=jnp.float32) + b1_ref[...])
    h = _leaky(jnp.dot(h.astype(w2_ref.dtype), w2_ref[...],
                       preferred_element_type=jnp.float32) + b2_ref[...])
    # last conv has no activation (matches the PyTorch module)
    h = jnp.dot(h.astype(w3_ref.dtype), w3_ref[...],
                preferred_element_type=jnp.float32) + b3_ref[...]   # (bt*lt, C3)

    # ---- running max over the points axis ----
    max_sc[...] = jnp.maximum(max_sc[...],
                              jnp.max(h.reshape(bt, lt, c3), axis=1))

    # ---- FC head + reparameterize on the last points tile ----
    @pl.when(l_idx == pl.num_programs(1) - 1)
    def _():
        m = max_sc[...]                                             # (bt, C3) f32
        logit = _leaky(jnp.dot(m, wfc_ref[...],
                               preferred_element_type=jnp.float32) + bfc_ref[...])
        ml = jnp.dot(logit, wh_ref[...],
                     preferred_element_type=jnp.float32) + bh_ref[...]  # (bt, 2Z)
        zdim = ml.shape[-1] // 2
        mu = ml[:, :zdim]
        lv = ml[:, zdim:]
        z = eps_ref[:, 0, :] * jnp.exp(0.5 * lv) + mu               # (bt, Z)
        # lane-dense output slab: [z | mu | logvar]
        out_ref[:, 0, :] = jnp.concatenate([z, ml], axis=-1)


def encoder_forward(x_ncl, params, eps, *, batch_tile=None, l_tile=None,
                    conv_dtype=jnp.bfloat16):
    """x_ncl: (B, C_in, L) float32 (PyTorch NCL layout). Returns (z, mu, logvar)."""
    (w1, b1, w2, b2, w3, b3, wfc, bfc, wh, bh) = params
    B, C_in, L = x_ncl.shape
    C1, C2, C3 = w1.shape[1], w2.shape[1], w3.shape[1]
    H = wfc.shape[1]
    Z2 = wh.shape[1]
    Z = Z2 // 2

    # Channels-last once in the wrapper (tiny: C_in = 3 + num_features) and
    # cast the conv path to bf16 (f32 accumulation in-kernel keeps accuracy).
    x_nlc = jnp.transpose(x_ncl, (0, 2, 1)).astype(conv_dtype)      # (B, L, C_in)
    w1c, w2c, w3c = (w.astype(conv_dtype) for w in (w1, w2, w3))
    eps3 = eps.reshape(B, 1, Z)

    # ---- tile selection ----
    if batch_tile is None:
        # >= 2 parallel grid steps so both v7x TensorCores get work; on
        # v5e/v6e (single TC) the extra step is negligible at these sizes.
        batch_tile = B // 2 if (B % 2 == 0 and B > 1) else B
    bt = batch_tile
    assert B % bt == 0, "batch must be divisible by the batch tile"
    n_bt = B // bt

    if l_tile is None:
        l_tile = next((t for t in (2048, 1024, 512, 256, 128) if L % t == 0), L)
    lt = l_tile
    assert L % lt == 0, "num_points must be divisible by the points tile"
    n_lt = L // lt

    # ---- VMEM budget (sized for v7x's 32 MiB scoped default; cap at 64 MiB) ----
    isz = jnp.dtype(conv_dtype).itemsize
    est = (2 * bt * lt * C_in * isz                 # double-buffered x tile
           + bt * lt * (C1 + C2 + C3) * 4           # f32 activations
           + 2 * 4 * sum(int(p.size) for p in params)
           + bt * C3 * 4 + 2 * bt * (Z + 3 * Z) * 4)
    vmem_limit = None
    if est > 24 * (1 << 20):
        vmem_limit = min(int(1.5 * est), 64 * (1 << 20))

    conv_flops = 2 * B * L * (C_in * C1 + C1 * C2 + C2 * C3)
    head_flops = 2 * B * (C3 * H + H * Z2)
    bytes_accessed = (x_nlc.size * isz + 4 * sum(int(p.size) for p in params)
                      + 4 * (eps.size + B * 3 * Z))

    vmem = pltpu.MemorySpace.VMEM
    const = lambda i, l: (0, 0)   # weights/biases: same block every grid step
    # NOTE: the weight blocks are tiny, so default double-buffering costs
    # negligible VMEM; pipeline_mode=pl.Buffered(1) was intentionally skipped.

    grid_spec = pltpu.PrefetchScalarGridSpec(
        num_scalar_prefetch=0,
        grid=(n_bt, n_lt),
        in_specs=[
            pl.BlockSpec((bt, lt, C_in), lambda i, l: (i, l, 0), memory_space=vmem),
            pl.BlockSpec((C_in, C1), const, memory_space=vmem),
            pl.BlockSpec((1, C1), const, memory_space=vmem),
            pl.BlockSpec((C1, C2), const, memory_space=vmem),
            pl.BlockSpec((1, C2), const, memory_space=vmem),
            pl.BlockSpec((C2, C3), const, memory_space=vmem),
            pl.BlockSpec((1, C3), const, memory_space=vmem),
            pl.BlockSpec((C3, H), const, memory_space=vmem),
            pl.BlockSpec((1, H), const, memory_space=vmem),
            pl.BlockSpec((H, Z2), const, memory_space=vmem),
            pl.BlockSpec((1, Z2), const, memory_space=vmem),
            pl.BlockSpec((bt, 1, Z), lambda i, l: (i, 0, 0), memory_space=vmem),
        ],
        out_specs=pl.BlockSpec((bt, 1, 3 * Z), lambda i, l: (i, 0, 0),
                               memory_space=vmem),
        scratch_shapes=[pltpu.VMEM((bt, C3), jnp.float32)],
    )

    zml = pl.pallas_call(
        _encoder_kernel,
        out_shape=jax.ShapeDtypeStruct((B, 1, 3 * Z), jnp.float32),
        grid_spec=grid_spec,
        compiler_params=pltpu.CompilerParams(
            dimension_semantics=("parallel", "arbitrary"),
            vmem_limit_bytes=vmem_limit),
        cost_estimate=pl.CostEstimate(
            flops=int(conv_flops + head_flops),
            transcendentals=int(B * Z),
            bytes_accessed=int(bytes_accessed),
        ),
    )(x_nlc, w1c, b1, w2c, b2, w3c, b3, wfc, bfc, wh, bh, eps3)

    zml = zml.reshape(B, 3 * Z)
    z, mu, logvar = zml[:, :Z], zml[:, Z:2 * Z], zml[:, 2 * Z:]
    return z, mu, logvar


# TODO(synk): kernel_size > 1 Conv1d would need an overlapping (halo) points
# BlockSpec; the hparams used here have kernel_size=1 (pointwise) throughout.


def init_params(key, c_in, filters, latent_dim):
    """Deterministic synthetic weights (shapes match the PyTorch module).

    Conv/linear weights are stored (in, out); biases are lane-major (1, C)
    rows; the mu and logvar heads are pre-concatenated into one (H, 2*Z)
    weight so the head is a single matmul.
    """
    c1, c2, c3 = filters
    h = c2  # fc hidden = encoder_filters[-2]
    keys = jax.random.split(key, 10)

    def w(k, shape, fan_in):
        return (jax.random.normal(k, shape, jnp.float32) / jnp.sqrt(fan_in))

    w1 = w(keys[0], (c_in, c1), c_in)
    b1 = w(keys[1], (1, c1), c_in)
    w2 = w(keys[2], (c1, c2), c1)
    b2 = w(keys[3], (1, c2), c1)
    w3 = w(keys[4], (c2, c3), c2)
    b3 = w(keys[5], (1, c3), c2)
    wfc = w(keys[6], (c3, h), c3)
    bfc = w(keys[7], (1, h), c3)
    wh = w(keys[8], (h, 2 * latent_dim), h)   # [mu | logvar] concatenated
    bh = w(keys[9], (1, 2 * latent_dim), h)
    return (w1, b1, w2, b2, w3, b3, wfc, bfc, wh, bh)


def reference_forward(x_ncl, params, eps, *, conv_dtype=jnp.float32):
    """Pure-JAX reference with the same mixed-precision flow as the kernel."""
    (w1, b1, w2, b2, w3, b3, wfc, bfc, wh, bh) = params
    f32 = jnp.float32
    h = jnp.transpose(x_ncl, (0, 2, 1)).astype(conv_dtype)          # (B, L, C_in)
    h = _leaky(jnp.dot(h, w1.astype(conv_dtype), preferred_element_type=f32) + b1)
    h = _leaky(jnp.dot(h.astype(conv_dtype), w2.astype(conv_dtype),
                       preferred_element_type=f32) + b2)
    h = jnp.dot(h.astype(conv_dtype), w3.astype(conv_dtype),
                preferred_element_type=f32) + b3
    m = jnp.max(h, axis=1)                                          # (B, C3)
    logit = _leaky(jnp.dot(m, wfc) + bfc)
    ml = jnp.dot(logit, wh) + bh
    Z = wh.shape[1] // 2
    mu, lv = ml[:, :Z], ml[:, Z:]
    z = eps * jnp.exp(0.5 * lv) + mu
    return z, mu, lv


if __name__ == "__main__":
    # Small shapes consistent with the module:
    #   num_features=1 -> in_channels = 3 + 1 = 4, batch=2, num_points=512
    B, num_points, num_features = 2, 512, 1
    C_in = 3 + num_features
    filters = [32, 64, 128]
    latent_dim = 16

    key = jax.random.PRNGKey(0)
    k_x, k_p, k_eps = jax.random.split(key, 3)

    x = jax.random.normal(k_x, (B, C_in, num_points), jnp.float32)  # PyTorch NCL
    params = init_params(k_p, C_in, filters, latent_dim)
    # reparameterize() draws eps ~ N(0, 1); drawn in the wrapper (RNG is glue)
    eps = jax.random.normal(k_eps, (B, latent_dim), jnp.float32)

    conv_dtype = jnp.bfloat16   # bf16 conv inputs, f32 accumulation (v6e/v7x MXU)
    # l_tile=128 forces several points-axis grid steps to exercise the
    # pipelined running-max reduction even at this small demo size.
    z, mu, logvar = jax.block_until_ready(
        encoder_forward(x, params, eps, l_tile=128, conv_dtype=conv_dtype))

    z_ref, mu_ref, lv_ref = reference_forward(x, params, eps, conv_dtype=conv_dtype)
    assert jnp.allclose(mu, mu_ref, atol=1e-2, rtol=1e-2), "mu mismatch"
    assert jnp.allclose(logvar, lv_ref, atol=1e-2, rtol=1e-2), "logvar mismatch"
    assert jnp.allclose(z, z_ref, atol=1e-2, rtol=1e-2), "z mismatch"

    print("KERNEL_OK")
</pallas_src>

<mosaic_0001>
module attributes {stable_mosaic.version = 11 : i64} {
  func.func @_encoder_kernel(%arg0: i32, %arg1: i32, %arg2: memref<1x128x4xbf16, #tpu.memory_space<vmem>>, %arg3: memref<4x32xbf16, #tpu.memory_space<vmem>>, %arg4: memref<1x32xf32, #tpu.memory_space<vmem>>, %arg5: memref<32x64xbf16, #tpu.memory_space<vmem>>, %arg6: memref<1x64xf32, #tpu.memory_space<vmem>>, %arg7: memref<64x128xbf16, #tpu.memory_space<vmem>>, %arg8: memref<1x128xf32, #tpu.memory_space<vmem>>, %arg9: memref<128x64xf32, #tpu.memory_space<vmem>>, %arg10: memref<1x64xf32, #tpu.memory_space<vmem>>, %arg11: memref<64x32xf32, #tpu.memory_space<vmem>>, %arg12: memref<1x32xf32, #tpu.memory_space<vmem>>, %arg13: memref<1x1x16xf32, #tpu.memory_space<vmem>>, %arg14: memref<1x1x48xf32, #tpu.memory_space<vmem>>, %arg15: memref<1x128xf32, #tpu.memory_space<vmem>>) attributes {dimension_semantics = [#tpu.dimension_semantics<parallel>, #tpu.dimension_semantics<arbitrary>], iteration_bounds = array<i64: 2, 4>, scalar_prefetch = 0 : i64, scratch_operands = 1 : i64, tpu.core_type = #tpu.core_type<tc>, window_params = [{transform_indices = @transform_0, window_bounds = array<i64: 1, 128, 4>}, {pipeline_mode = #tpu.pipeline_mode<synchronous>, transform_indices = @transform_1, window_bounds = array<i64: 4, 32>}, {pipeline_mode = #tpu.pipeline_mode<synchronous>, transform_indices = @transform_2, window_bounds = array<i64: 1, 32>}, {pipeline_mode = #tpu.pipeline_mode<synchronous>, transform_indices = @transform_3, window_bounds = array<i64: 32, 64>}, {pipeline_mode = #tpu.pipeline_mode<synchronous>, transform_indices = @transform_4, window_bounds = array<i64: 1, 64>}, {pipeline_mode = #tpu.pipeline_mode<synchronous>, transform_indices = @transform_5, window_bounds = array<i64: 64, 128>}, {pipeline_mode = #tpu.pipeline_mode<synchronous>, transform_indices = @transform_6, window_bounds = array<i64: 1, 128>}, {pipeline_mode = #tpu.pipeline_mode<synchronous>, transform_indices = @transform_7, window_bounds = array<i64: 128, 64>}, {pipeline_mode = #tpu.pipeline_mode<synchronous>, transform_indices = @transform_8, window_bounds = array<i64: 1, 64>}, {pipeline_mode = #tpu.pipeline_mode<synchronous>, transform_indices = @transform_9, window_bounds = array<i64: 64, 32>}, {pipeline_mode = #tpu.pipeline_mode<synchronous>, transform_indices = @transform_10, window_bounds = array<i64: 1, 32>}, {transform_indices = @transform_11, window_bounds = array<i64: 1, 1, 16>}, {transform_indices = @transform_12, window_bounds = array<i64: 1, 1, 48>}]} {
    %c0_i32 = arith.constant 0 : i32
    %0 = arith.cmpi eq, %arg1, %c0_i32 : i32
    %1 = arith.extui %0 : i1 to i32
    %c0_i32_0 = arith.constant 0 : i32
    %2 = arith.cmpi ne, %1, %c0_i32_0 : i32
    scf.if %2 {
      %cst_27 = arith.constant 0xFF800000 : f32
      %40 = vector.broadcast %cst_27 : f32 to vector<1x128xf32>
      %c0_28 = arith.constant 0 : index
      %c0_29 = arith.constant 0 : index
      %41 = vector.load %arg15[%c0_28, %c0_29] : memref<1x128xf32, #tpu.memory_space<vmem>>, vector<1x128xf32>
      tpu.vector_store %arg15[%c0_28, %c0_29], %40 {strides = array<i32>} : memref<1x128xf32, #tpu.memory_space<vmem>>, vector<1x128xf32>,
    } else {
    }
    %c0 = arith.constant 0 : index
    %c0_1 = arith.constant 0 : index
    %c0_2 = arith.constant 0 : index
    %3 = vector.load %arg2[%c0, %c0_1, %c0_2] : memref<1x128x4xbf16, #tpu.memory_space<vmem>>, vector<1x128x4xbf16>
    %4 = vector.shape_cast %3 : vector<1x128x4xbf16> to vector<128x4xbf16>
    %c0_3 = arith.constant 0 : index
    %c0_4 = arith.constant 0 : index
    %5 = vector.load %arg3[%c0_3, %c0_4] : memref<4x32xbf16, #tpu.memory_space<vmem>>, vector<4x32xbf16>
    %cst = arith.constant dense<0.000000e+00> : vector<128x32xf32>
    %6 = tpu.matmul %4, %5, %cst {dimension_numbers = #tpu.dot_dimension_numbers<[1], [0], [0], [1], [0, 0, 1, 1], [], []>} : vector<128x4xbf16>, vector<4x32xbf16>, vector<128x32xf32> -> vector<128x32xf32>
    %c0_5 = arith.constant 0 : index
    %c0_6 = arith.constant 0 : index
    %7 = vector.load %arg4[%c0_5, %c0_6] : memref<1x32xf32, #tpu.memory_space<vmem>>, vector<1x32xf32>
    %8 = vector.broadcast %7 : vector<1x32xf32> to vector<128x32xf32>
    %9 = arith.addf %6, %8 : vector<128x32xf32>
    %cst_7 = arith.constant 0.000000e+00 : f32
    %10 = vector.broadcast %cst_7 : f32 to vector<128x32xf32>
    %11 = arith.cmpf ogt, %9, %10 : vector<128x32xf32>
    %cst_8 = arith.constant 2.000000e-01 : f32
    %12 = vector.broadcast %cst_8 : f32 to vector<128x32xf32>
    %13 = arith.mulf %12, %9 : vector<128x32xf32>
    %14 = arith.select %11, %9, %13 : vector<128x32xi1>, vector<128x32xf32>
    %15 = arith.truncf %14 : vector<128x32xf32> to vector<128x32xbf16>
    %c0_9 = arith.constant 0 : index
    %c0_10 = arith.constant 0 : index
    %16 = vector.load %arg5[%c0_9, %c0_10] : memref<32x64xbf16, #tpu.memory_space<vmem>>, vector<32x64xbf16>
    %cst_11 = arith.constant dense<0.000000e+00> : vector<128x64xf32>
    %17 = tpu.matmul %15, %16, %cst_11 {dimension_numbers = #tpu.dot_dimension_numbers<[1], [0], [0], [1], [0, 0, 1, 1], [], []>} : vector<128x32xbf16>, vector<32x64xbf16>, vector<128x64xf32> -> vector<128x64xf32>
    %c0_12 = arith.constant 0 : index
    %c0_13 = arith.constant 0 : index
    %18 = vector.load %arg6[%c0_12, %c0_13] : memref<1x64xf32, #tpu.memory_space<vmem>>, vector<1x64xf32>
    %19 = vector.broadcast %18 : vector<1x64xf32> to vector<128x64xf32>
    %20 = arith.addf %17, %19 : vector<128x64xf32>
    %cst_14 = arith.constant 0.000000e+00 : f32
    %21 = vector.broadcast %cst_14 : f32 to vector<128x64xf32>
    %22 = arith.cmpf ogt, %20, %21 : vector<128x64xf32>
    %cst_15 = arith.constant 2.000000e-01 : f32
    %23 = vector.broadcast %cst_15 : f32 to vector<128x64xf32>
    %24 = arith.mulf %23, %20 : vector<128x64xf32>
    %25 = arith.select %22, %20, %24 : vector<128x64xi1>, vector<128x64xf32>
    %26 = arith.truncf %25 : vector<128x64xf32> to vector<128x64xbf16>
    %c0_16 = arith.constant 0 : index
    %c0_17 = arith.constant 0 : index
    %27 = vector.load %arg7[%c0_16, %c0_17] : memref<64x128xbf16, #tpu.memory_space<vmem>>, vector<64x128xbf16>
    %cst_18 = arith.constant dense<0.000000e+00> : vector<128x128xf32>
    %28 = tpu.matmul %26, %27, %cst_18 {dimension_numbers = #tpu.dot_dimension_numbers<[1], [0], [0], [1], [0, 0, 1, 1], [], []>} : vector<128x64xbf16>, vector<64x128xbf16>, vector<128x128xf32> -> vector<128x128xf32>
    %c0_19 = arith.constant 0 : index
    %c0_20 = arith.constant 0 : index
    %29 = vector.load %arg8[%c0_19, %c0_20] : memref<1x128xf32, #tpu.memory_space<vmem>>, vector<1x128xf32>
    %30 = vector.broadcast %29 : vector<1x128xf32> to vector<128x128xf32>
    %31 = arith.addf %28, %30 : vector<128x128xf32>
    %c0_21 = arith.constant 0 : index
    %c0_22 = arith.constant 0 : index
    %32 = vector.load %arg15[%c0_21, %c0_22] : memref<1x128xf32, #tpu.memory_space<vmem>>, vector<1x128xf32>
    %33 = vector.shape_cast %31 : vector<128x128xf32> to vector<1x128x128xf32>
    %cst_23 = arith.constant dense<0xFF800000> : vector<1x128xf32>
    %34 = vector.multi_reduction <maximumf>, %33, %cst_23 [1] : vector<1x128x128xf32> to vector<1x128xf32>
    %35 = arith.maximumf %32, %34 : vector<1x128xf32>
    %c0_24 = arith.constant 0 : index
    %c0_25 = arith.constant 0 : index
    %36 = vector.load %arg15[%c0_24, %c0_25] : memref<1x128xf32, #tpu.memory_space<vmem>>, vector<1x128xf32>
    tpu.vector_store %arg15[%c0_24, %c0_25], %35 {strides = array<i32>} : memref<1x128xf32, #tpu.memory_space<vmem>>, vector<1x128xf32>,
    %c3_i32 = arith.constant 3 : i32
    %37 = arith.cmpi eq, %arg1, %c3_i32 : i32
    %38 = arith.extui %37 : i1 to i32
    %c0_i32_26 = arith.constant 0 : i32
    %39 = arith.cmpi ne, %38, %c0_i32_26 : i32
    scf.if %39 {
      %c0_27 = arith.constant 0 : index
      %c0_28 = arith.constant 0 : index
      %40 = vector.load %arg15[%c0_27, %c0_28] : memref<1x128xf32, #tpu.memory_space<vmem>>, vector<1x128xf32>
      %c0_29 = arith.constant 0 : index
      %c0_30 = arith.constant 0 : index
      %41 = vector.load %arg9[%c0_29, %c0_30] : memref<128x64xf32, #tpu.memory_space<vmem>>, vector<128x64xf32>
      %cst_31 = arith.constant dense<0.000000e+00> : vector<1x64xf32>
      %42 = tpu.matmul %40, %41, %cst_31 {dimension_numbers = #tpu.dot_dimension_numbers<[1], [0], [0], [1], [0, 0, 1, 1], [], []>} : vector<1x128xf32>, vector<128x64xf32>, vector<1x64xf32> -> vector<1x64xf32>
      %c0_32 = arith.constant 0 : index
      %c0_33 = arith.constant 0 : index
      %43 = vector.load %arg10[%c0_32, %c0_33] : memref<1x64xf32, #tpu.memory_space<vmem>>, vector<1x64xf32>
      %44 = arith.addf %42, %43 : vector<1x64xf32>
      %cst_34 = arith.constant 0.000000e+00 : f32
      %45 = vector.broadcast %cst_34 : f32 to vector<1x64xf32>
      %46 = arith.cmpf ogt, %44, %45 : vector<1x64xf32>
      %cst_35 = arith.constant 2.000000e-01 : f32
      %47 = vector.broadcast %cst_35 : f32 to vector<1x64xf32>
      %48 = arith.mulf %47, %44 : vector<1x64xf32>
      %49 = arith.select %46, %44, %48 : vector<1x64xi1>, vector<1x64xf32>
      %c0_36 = arith.constant 0 : index
      %c0_37 = arith.constant 0 : index
      %50 = vector.load %arg11[%c0_36, %c0_37] : memref<64x32xf32, #tpu.memory_space<vmem>>, vector<64x32xf32>
      %cst_38 = arith.constant dense<0.000000e+00> : vector<1x32xf32>
      %51 = tpu.matmul %49, %50, %cst_38 {dimension_numbers = #tpu.dot_dimension_numbers<[1], [0], [0], [1], [0, 0, 1, 1], [], []>} : vector<1x64xf32>, vector<64x32xf32>, vector<1x32xf32> -> vector<1x32xf32>
      %c0_39 = arith.constant 0 : index
      %c0_40 = arith.constant 0 : index
      %52 = vector.load %arg12[%c0_39, %c0_40] : memref<1x32xf32, #tpu.memory_space<vmem>>, vector<1x32xf32>
      %53 = arith.addf %51, %52 : vector<1x32xf32>
      %54 = vector.extract_strided_slice %53 {offsets = [0, 0], sizes = [1, 16], strides = [1, 1]} : vector<1x32xf32> to vector<1x16xf32>
      %55 = vector.extract_strided_slice %53 {offsets = [0, 16], sizes = [1, 16], strides = [1, 1]} : vector<1x32xf32> to vector<1x16xf32>
      %c0_41 = arith.constant 0 : index
      %c0_42 = arith.constant 0 : index
      %c0_43 = arith.constant 0 : index
      %56 = vector.load %arg13[%c0_41, %c0_42, %c0_43] : memref<1x1x16xf32, #tpu.memory_space<vmem>>, vector<1x1x16xf32>
      %57 = vector.shape_cast %56 : vector<1x1x16xf32> to vector<1x16xf32>
      %cst_44 = arith.constant 5.000000e-01 : f32
      %58 = vector.broadcast %cst_44 : f32 to vector<1x16xf32>
      %59 = arith.mulf %58, %55 : vector<1x16xf32>
      %60 = math.exp %59 : vector<1x16xf32>
      %61 = arith.mulf %57, %60 : vector<1x16xf32>
      %62 = arith.addf %61, %54 : vector<1x16xf32>
      %63 = tpu.concatenate %62, %53 in 1 : vector<1x16xf32>, vector<1x32xf32> -> vector<1x48xf32>
      %c0_45 = arith.constant 0 : index
      %c0_46 = arith.constant 0 : index
      %c0_47 = arith.constant 0 : index
      %64 = vector.load %arg14[%c0_45, %c0_46, %c0_47] : memref<1x1x48xf32, #tpu.memory_space<vmem>>, vector<1x1x48xf32>
      %65 = vector.shape_cast %64 : vector<1x1x48xf32> to vector<1x48xf32>
      %66 = vector.shape_cast %63 : vector<1x48xf32> to vector<1x1x48xf32>
      tpu.vector_store %arg14[%c0_45, %c0_46, %c0_47], %66 {strides = array<i32>} : memref<1x1x48xf32, #tpu.memory_space<vmem>>, vector<1x1x48xf32>,
    } else {
    }
    return
  }
  func.func @transform_0(%arg0: i32, %arg1: i32) -> (i32, i32, i32) {
    %c0_i32 = arith.constant 0 : i32
    %c0_i32_0 = arith.constant 0 : i32
    return %arg0, %arg1, %c0_i32 : i32, i32, i32
  }
  func.func @transform_1(%arg0: i32, %arg1: i32) -> (i32, i32) {
    %c0_i32 = arith.constant 0 : i32
    %c0_i32_0 = arith.constant 0 : i32
    %c0_i32_1 = arith.constant 0 : i32
    return %c0_i32, %c0_i32_0 : i32, i32
  }
  func.func @transform_2(%arg0: i32, %arg1: i32) -> (i32, i32) {
    %c0_i32 = arith.constant 0 : i32
    %c0_i32_0 = arith.constant 0 : i32
    %c0_i32_1 = arith.constant 0 : i32
    return %c0_i32, %c0_i32_0 : i32, i32
  }
  func.func @transform_3(%arg0: i32, %arg1: i32) -> (i32, i32) {
    %c0_i32 = arith.constant 0 : i32
    %c0_i32_0 = arith.constant 0 : i32
    %c0_i32_1 = arith.constant 0 : i32
    return %c0_i32, %c0_i32_0 : i32, i32
  }
  func.func @transform_4(%arg0: i32, %arg1: i32) -> (i32, i32) {
    %c0_i32 = arith.constant 0 : i32
    %c0_i32_0 = arith.constant 0 : i32
    %c0_i32_1 = arith.constant 0 : i32
    return %c0_i32, %c0_i32_0 : i32, i32
  }
  func.func @transform_5(%arg0: i32, %arg1: i32) -> (i32, i32) {
    %c0_i32 = arith.constant 0 : i32
    %c0_i32_0 = arith.constant 0 : i32
    %c0_i32_1 = arith.constant 0 : i32
    return %c0_i32, %c0_i32_0 : i32, i32
  }
  func.func @transform_6(%arg0: i32, %arg1: i32) -> (i32, i32) {
    %c0_i32 = arith.constant 0 : i32
    %c0_i32_0 = arith.constant 0 : i32
    %c0_i32_1 = arith.constant 0 : i32
    return %c0_i32, %c0_i32_0 : i32, i32
  }
  func.func @transform_7(%arg0: i32, %arg1: i32) -> (i32, i32) {
    %c0_i32 = arith.constant 0 : i32
    %c0_i32_0 = arith.constant 0 : i32
    %c0_i32_1 = arith.constant 0 : i32
    return %c0_i32, %c0_i32_0 : i32, i32
  }
  func.func @transform_8(%arg0: i32, %arg1: i32) -> (i32, i32) {
    %c0_i32 = arith.constant 0 : i32
    %c0_i32_0 = arith.constant 0 : i32
    %c0_i32_1 = arith.constant 0 : i32
    return %c0_i32, %c0_i32_0 : i32, i32
  }
  func.func @transform_9(%arg0: i32, %arg1: i32) -> (i32, i32) {
    %c0_i32 = arith.constant 0 : i32
    %c0_i32_0 = arith.constant 0 : i32
    %c0_i32_1 = arith.constant 0 : i32
    return %c0_i32, %c0_i32_0 : i32, i32
  }
  func.func @transform_10(%arg0: i32, %arg1: i32) -> (i32, i32) {
    %c0_i32 = arith.constant 0 : i32
    %c0_i32_0 = arith.constant 0 : i32
    %c0_i32_1 = arith.constant 0 : i32
    return %c0_i32, %c0_i32_0 : i32, i32
  }
  func.func @transform_11(%arg0: i32, %arg1: i32) -> (i32, i32, i32) {
    %c0_i32 = arith.constant 0 : i32
    %c0_i32_0 = arith.constant 0 : i32
    %c0_i32_1 = arith.constant 0 : i32
    return %arg0, %c0_i32, %c0_i32_0 : i32, i32, i32
  }
  func.func @transform_12(%arg0: i32, %arg1: i32) -> (i32, i32, i32) {
    %c0_i32 = arith.constant 0 : i32
    %c0_i32_0 = arith.constant 0 : i32
    %c0_i32_1 = arith.constant 0 : i32
    return %arg0, %c0_i32, %c0_i32_0 : i32, i32, i32
  }
}

</mosaic_0001>

<bundles_post_ra>
// kernel: tpu_custom_call.1
= control target key start
LH: loop header
LB: loop body
LE: loop exit
PB: predicated region body
PF: predicated region fallthrough
CT: control target
= control target key end

     0   :  { %17 = vsyncpa [#allocation4], 0  ;;  %s1793_s0 = inlined_call_operand.vmem [shape: bf16[2,512,4], index: 0, kind: input, shape index: {}]   ;;  %s1794_s1 = inlined_call_operand.vmem [shape: bf16[4,32], index: 1, kind: input, shape index: {}]   ;;  %s1795_s2 = inlined_call_operand.vmem [shape: f32[1,32], index: 2, kind: input, shape index: {}]   ;;  %s1796_s3 = inlined_call_operand.vmem [shape: bf16[32,64], index: 3, kind: input, shape index: {}]   ;;  %s1797_s4 = inlined_call_operand.vmem [shape: f32[1,64], index: 4, kind: input, shape index: {}]   ;;  %s1798_s5 = inlined_call_operand.vmem [shape: bf16[64,128], index: 5, kind: input, shape index: {}]   ;;  %s1799_s6 = inlined_call_operand.vmem [shape: f32[1,128], index: 6, kind: input, shape index: {}]   ;;  %s1800_s7 = inlined_call_operand.vmem [shape: f32[128,64], index: 7, kind: input, shape index: {}]   ;;  %s1801_s8 = inlined_call_operand.vmem [shape: f32[1,64], index: 8, kind: input, shape index: {}]   ;;  %s1802_s9 = inlined_call_operand.vmem [shape: f32[64,32], index: 9, kind: input, shape index: {}]   ;;  %s1803_s10 = inlined_call_operand.vmem [shape: f32[1,32], index: 10, kind: input, shape index: {}]   ;;  %s1804_s11 = inlined_call_operand.vmem [shape: f32[2,1,16], index: 11, kind: input, shape index: {}]   ;;  %s1805_s12 = inlined_call_operand.hbm [shape: f32[2,1,48], index: 12, kind: output, shape index: {}]  }
   0x1   :  { %19 = vsyncpa [#allocation4 + $0x1], 0  ;;  %s1484_s21 = smov 0   ;;  %s1486_s22 = smov 0  }
   0x2   :  { %s1488_s23 = smov 0   ;;  %s1490_s24 = smov 0  }
   0x3   :  { %s1492_s25 = smov 0   ;;  %s1494_s26 = smov 0  }
   0x4   :  { %s1496_s27 = smov 0   ;;  %s1498_s28 = smov 0  }
   0x5 LB: > { %1816 = sst [smem:[#allocation6_spill]] %s1386_s21  ;;  %s1127_s29 = sadd.s32 4294967295, %s1414_s28   ;;  %s1414_s28 = sphi %s1498_s28, %s25_s28   ;;  %s1410_s27 = sphi %s1496_s27, %s1837_s27   ;;  %s1406_s26 = sphi %s1494_s26, %s1836_s26   ;;  %s1402_s25 = sphi %s1492_s25, %s1835_s25   ;;  %s1398_s24 = sphi %s1490_s24, %s1834_s24   ;;  %s1394_s23 = sphi %s1488_s23, %s1833_s23   ;;  %s1390_s22 = sphi %s1486_s22, %s1839_s22   ;;  %s1386_s21 = sphi %s1484_s21, %s1838_s21  }
   0x6   : > { %1817 = sst [smem:[#allocation7_spill]] %s1394_s23  ;;  %s1128_s30 = sadd.s32 4294967294, %s1414_s28  }
   0x7   : > { %1818 = sst [smem:[#allocation8_spill]] %s1406_s26  ;;  %s34_s13 = sadd.s32 1, %s1406_s26 }
   0x8   : > { %1819 = sst [smem:[#allocation9_spill]] %s1410_s27  ;;  %p35_p0 = scmp.ge.s32.totalorder %s34_s13, 4 }
   0x9   : > { %1820 = sst [smem:[#allocation10_spill]] %s1414_s28  ;;  %s37_s14 = sadd.s32 1, %s1410_s27 }
   0xa   : > { %p318_p1 = scmp.ne.s32.totalorder %s1394_s23, %s1390_s22  ;;  %p319_p2 = scmp.eq.s32.totalorder %s1127_s29, 7 }
   0xb   : > { %s1841_s13 = smov (%p35_p0, %s34_s13), 0  ;;  %s1843_s14 = smov (!%p35_p0, %s37_s14), %s1410_s27 }
   0xc   : > { %1821 = sst [smem:[#allocation11_spill]] %s1841_s13  ;;  %p1533_p3 = por %p319_p2, %p318_p1 }
   0xd   : > { %p324_p4 = scmp.ne.s32.totalorder %s1390_s22, %s1386_s21  ;;  %p39_p5 = scmp.ge.s32.totalorder %s1843_s14, 2 }
   0xe   : > { %s1822_s15 = scalar_select %p1533_p3, 1, 0 }
   0xf   : > { %p325_p6 = scmp.eq.s32.totalorder %s1128_s30, 7  ;;  %p1131_p7 = scmp.ge.s32.totalorder %s1414_s28, 1 }
  0x10   : > { %1823 = sst [smem:[#allocation12_spill]] %s1822_s15  ;;  %p392_p8 = scmp.lt.s32.totalorder %s1414_s28, 9 }
  0x11   : > { %s1845_s14 = smov (%p39_p5, %s1843_s14), 0  ;;  %p1543_p9 = por %p325_p6, %p324_p4 }
  0x12   : > { %1824 = sst [smem:[#allocation13_spill]] %s1845_s14  ;;  %p393_p10 = pnand %p1131_p7, %p392_p8 }
  0x13   : > { %s1825_s16 = scalar_select %p1543_p9, 1, 0 }
  0x14   : > { %s305_s17 = ssub.s32 %s1410_s27, %s1845_s14  ;;  %s308_s18 = sadd.s32 1, %s1394_s23 }
  0x15   : > { %1826 = sst [smem:[#allocation14_spill]] %s1825_s16  ;;  %p306_p11 = scmp.eq.s32.totalorder %s305_s17, 0 }
  0x16   : > { %396 = sbr.rel (%p393_p10) target bundleno = 1044 (0x414), region = 68  ;;  %s438_s20 = sand.u32 (!%p393_p10), 1, %s1390_s22  }
  0x17   : > { %s1551_s19 = scalar_select %p306_p11, %s1394_s23, %s308_s18  }
  0x18   : > { %s1132_s29 = sshll.u32 (!%p393_p10), %s1398_s24, 4  ;;  %p441_p12 = scmp.lt.s32.totalorder (!%p393_p10), %s1402_s25, 1 }
  0x19   : > { %1827 = sst [smem:[#allocation15_spill]] %s1551_s19  ;;  %p443_p13 = scmp.lt.s32.totalorder (!%p393_p10), %s1132_s29, 63 }
  0x1a   : > { %s1569_s21 = scalar_lea.vmem (!%p393_p10), [#allocation3], %s438_s20  ;;  %p1135_p0 = scmp.ne.s32.totalorder (!%p393_p10), %s1398_s24, 0 }
  0x1b   : > { %s1557_s30 = scalar_select %p441_p12, %s1402_s25, 1 }
  0x1c   : > { %s1847_s29 = smov (!%p443_p13, %s1132_s29), 63  ;;  %457 = sbr.rel (%p1135_p0) target bundleno = 35 (0x23), region = 72 }
  0x1d   : > { %s1133_s14 = sshll.u32 %s1557_s30, 6  ;;  %s452_s18 = scalar_lea.vmem %s1804_s11, %s1557_s30 }
  0x1e   : > { %s446_s27 = sadd.s32 %s1133_s14, %s1847_s29 }
  0x1f   : > { %s1134_s26 = sshll.u32 %s446_s27, 2 }
  0x20   : > { %s448_s16 = scalar_lea.vmem %s1793_s0, %s1134_s26 }
  0x21   : > { %v1416_v0 = vmov -inf  }
  0x22   : > { %458 = vst [vmem:[#allocation2] sm:$0x1] %v1416_v0 }
  0x23 PF: > { %v475_v1 = vld [vmem:[%s1794_s1] sm:$0x3]  ;;  %vm545_vm0 = vcmask 1041408   ;;  %vm520_vm1 = vcmask 31744   ;;  %v1221_v4 = vld [vmem:[%s448_s16 + $0x8] sm:$0xff]  ;;  %v1222_v5 = vld [vmem:[%s448_s16 + $0x10] sm:$0xff] }
  0x24   : > { %v547_v2 = vsel %vm545_vm0, %v475_v1, 0  ;;  %v1220_v3 = vld [vmem:[%s448_s16] sm:$0xff]  ;;  %v1223_v6 = vld [vmem:[%s448_s16 + $0x18] sm:$0xff]  ;;  %v1225_v9 = vld [vmem:[%s448_s16 + $0x28] sm:$0xff]  ;;  %vm674_vm4 = vcmask 261120   ;;  %p1216_p1 = scmp.ne.s32.totalorder %s1398_s24, 3 }
  0x25   : > { %556 = vmatpush.bf16.msra.mxu0 %v547_v2  ;;  %1234 = vmatpush.bf16.msra.mxu3 %v547_v2  ;;  %v1224_v7 = vld [vmem:[%s448_s16 + $0x20] sm:$0xff]  ;;  %v1227_v8 = vld [vmem:[%s448_s16 + $0x38] sm:$0xff]  ;;  %v1226_v10 = vld [vmem:[%s448_s16 + $0x30] sm:$0xff]  ;;  %s1417_s23 = smov (!%p1216_p1), 112   ;;  %s1418_s26 = smov (!%p1216_p1), 16  }
  0x26   : > { %v1229_v11 = vld [vmem:[%s1796_s3 + $0x8] sm:$0xff]  ;;  %v1228_v12 = vld [vmem:[%s1796_s3] sm:$0xff] }
  0x27   : > { %705 = vmatpush.bf16.msra.mxu1 %v1229_v11  ;;  %v1592_v14 = vld [vmem:[%s1795_s2] ss:$0 sm:$0xff] }
  0x28   : > { %1168 = vmatmul.msk.bf16.vlgmr.msra.gmra.mxu0 %vm520_vm1, %v1220_v3  ;;  %1175 = vmatmul.msk.bf16.vlgmr.msra.gmra.mxu3 %vm520_vm1, %v1227_v8 }
  0x29   : > { %1235 = vmatpush.bf16.msrb.mxu3 %v1229_v11  ;;  %v1233_v11 = vld [vmem:[%s1798_s5 + $0x18] sm:$0xff] }
  0x2a   : > { %869 = vmatpush.bf16.msra.mxu2 %v1233_v11 }
  0x2b   : > { %706 = vmatpush.bf16.msra.mxu1 %v1228_v12 }
  0x2d   : > { %1236 = vmatpush.bf16.msrb.mxu3 %v1228_v12 }
  0x31   : > { %1237 = vmatpush.bf16.msra.mxu3 %v1233_v11 }
  0x38   : > { %1169 = vmatmul.msk.bf16.gmra.mxu0 %vm520_vm1, %v1221_v4 }
  0x48   : > { %1170 = vmatmul.msk.bf16.gmra.mxu0 %vm520_vm1, %v1222_v5 }
  0x58   : > { %1171 = vmatmul.msk.bf16.gmra.mxu0 %vm520_vm1, %v1223_v6 }
  0x68   : > { %1172 = vmatmul.msk.bf16.gmra.mxu0 %vm520_vm1, %v1224_v7 }
  0x78   : > { %1173 = vmatmul.msk.bf16.gmra.mxu0 %vm520_vm1, %v1225_v9 }
  0x88   : > { %1174 = vmatmul.msk.bf16.gmra.mxu0 %vm520_vm1, %v1226_v10 }
  0xa5   : > { %v558_v13 = vpop.f32.mrf.mxu0 }
  0xa6   : > { %v559_v15 = vadd.f32 %v1592_v14, %v558_v13 }
  0xa8   : > { %v614_v17 = vmul.f32 0.2, %v559_v15  ;;  %vm598_vm2 = vcmp.gt.f32.partialorder %v559_v15, 0.0 }
  0xaa   : > { %v630_v20 = vsel %vm598_vm2, %v559_v15, %v614_v17  ;;  %v1232_v17 = vld [vmem:[%s1798_s5 + $0x10] sm:$0xff] }
  0xab   : > { %v593_v6 = vpop.f32.mrf.mxu3  ;;  %870 = vmatpush.bf16.msra.mxu2 %v1232_v17  ;;  %1238 = vmatpush.bf16.msra.mxu3 %v1232_v17 }
  0xad   : > { %v560_v16 = vpop.f32.mrf.mxu0 }
  0xae   : > { %v561_v18 = vadd.f32 %v1592_v14, %v560_v16 }
  0xb0   : > { %vm599_vm3 = vcmp.gt.f32.partialorder %v561_v18, 0.0  ;;  %v615_v19 = vmul.f32 0.2, %v561_v18 }
  0xb2   : > { %v631_v21 = vsel %vm599_vm3, %v561_v18, %v615_v19  ;;  %v594_v18 = vadd.f32 %v1592_v14, %v593_v6 }
  0xb3   : > { %v646_v22 = vpack.c.bf16 %v631_v21, %v630_v20  ;;  %v595_v16 = vpop.f32.mrf.mxu3  ;;  %v1231_v20 = vld [vmem:[%s1798_s5 + $0x8] sm:$0xff] }
  0xb4   : > { %v596_v19 = vadd.f32 %v1592_v14, %v595_v16  ;;  %871 = vmatpush.bf16.msra.mxu2 %v1231_v20  ;;  %1239 = vmatpush.bf16.msra.mxu3 %v1231_v20  ;;  %v628_v21 = vmul.f32 0.2, %v594_v18  ;;  %vm612_vm1 = vcmp.gt.f32.partialorder %v594_v18, 0.0 }
  0xb5   : > { %v563_v23 = vpop.f32.mrf.mxu0  ;;  %1184 = vmatmul.msk.bf16.vlgmr.msra.gmra.mxu1 %vm674_vm4, %v646_v22 }
  0xb6   : > { %v564_v24 = vadd.f32 %v1592_v14, %v563_v23  ;;  %v629_v22 = vmul.f32 0.2, %v596_v19  ;;  %vm613_vm2 = vcmp.gt.f32.partialorder %v596_v19, 0.0  ;;  %v1230_v23 = vld [vmem:[%s1798_s5] sm:$0xff] }
  0xb8   : > { %v616_v26 = vmul.f32 0.2, %v564_v24  ;;  %vm600_vm5 = vcmp.gt.f32.partialorder %v564_v24, 0.0  ;;  %872 = vmatpush.bf16.msra.mxu2 %v1230_v23  ;;  %1240 = vmatpush.bf16.msra.mxu3 %v1230_v23 }
  0xba   : > { %v632_v29 = vsel %vm600_vm5, %v564_v24, %v616_v26  ;;  %v644_v24 = vsel %vm612_vm1, %v594_v18, %v628_v21 }
  0xbd   : > { %v565_v25 = vpop.f32.mrf.mxu0 }
  0xbe   : > { %v566_v27 = vadd.f32 %v1592_v14, %v565_v25  ;;  %v645_v25 = vsel %vm613_vm2, %v596_v19, %v629_v22 }
  0xbf   : > { %v653_v26 = vpack.c.bf16 %v645_v25, %v644_v24 }
  0xc0   : > { %vm601_vm6 = vcmp.gt.f32.partialorder %v566_v27, 0.0  ;;  %v617_v28 = vmul.f32 0.2, %v566_v27 }
  0xc2   : > { %v633_v30 = vsel %vm601_vm6, %v566_v27, %v617_v28  ;;  %v1633_v27 = vld [vmem:[%s1797_s4] ss:$0 sm:$0xff]  ;;  %vm840_vm6 = vcmask 523264  }
  0xc3   : > { %v647_v31 = vpack.c.bf16 %v633_v30, %v632_v29 }
  0xc5   : > { %v568_v32 = vpop.f32.mrf.mxu0  ;;  %1185 = vmatmul.msk.bf16.gmra.mxu1 %vm674_vm4, %v647_v31 }
  0xc6   : > { %v569_v33 = vadd.f32 %v1592_v14, %v568_v32 }
  0xc8   : > { %v618_v35 = vmul.f32 0.2, %v569_v33  ;;  %vm602_vm7 = vcmp.gt.f32.partialorder %v569_v33, 0.0 }
  0xca   : > { %v634_v38 = vsel %vm602_vm7, %v569_v33, %v618_v35 }
  0xcd   : > { %v570_v34 = vpop.f32.mrf.mxu0 }
  0xce   : > { %v571_v36 = vadd.f32 %v1592_v14, %v570_v34 }
  0xd0   : > { %vm603_vm8 = vcmp.gt.f32.partialorder %v571_v36, 0.0  ;;  %v619_v37 = vmul.f32 0.2, %v571_v36 }
  0xd2   : > { %v635_v39 = vsel %vm603_vm8, %v571_v36, %v619_v37 }
  0xd3   : > { %v648_v40 = vpack.c.bf16 %v635_v39, %v634_v38 }
  0xd5   : > { %v573_v41 = vpop.f32.mrf.mxu0  ;;  %1186 = vmatmul.msk.bf16.gmra.mxu1 %vm674_vm4, %v648_v40 }
  0xd6   : > { %v574_v42 = vadd.f32 %v1592_v14, %v573_v41 }
  0xd8   : > { %v620_v44 = vmul.f32 0.2, %v574_v42  ;;  %vm604_vm9 = vcmp.gt.f32.partialorder %v574_v42, 0.0 }
  0xda   : > { %v636_v47 = vsel %vm604_vm9, %v574_v42, %v620_v44 }
  0xdd   : > { %v575_v43 = vpop.f32.mrf.mxu0 }
  0xde   : > { %v576_v45 = vadd.f32 %v1592_v14, %v575_v43 }
  0xe0   : > { %vm605_vm10 = vcmp.gt.f32.partialorder %v576_v45, 0.0  ;;  %v621_v46 = vmul.f32 0.2, %v576_v45 }
  0xe2   : > { %v637_v48 = vsel %vm605_vm10, %v576_v45, %v621_v46 }
  0xe3   : > { %v649_v49 = vpack.c.bf16 %v637_v48, %v636_v47 }
  0xe5   : > { %v578_v50 = vpop.f32.mrf.mxu0  ;;  %1187 = vmatmul.msk.bf16.gmra.mxu1 %vm674_vm4, %v649_v49 }
  0xe6   : > { %v579_v51 = vadd.f32 %v1592_v14, %v578_v50 }
  0xe8   : > { %v622_v53 = vmul.f32 0.2, %v579_v51  ;;  %vm606_vm11 = vcmp.gt.f32.partialorder %v579_v51, 0.0 }
  0xea   : > { %v638_v56 = vsel %vm606_vm11, %v579_v51, %v622_v53 }
  0xed   : > { %v580_v52 = vpop.f32.mrf.mxu0 }
  0xee   : > { %v581_v54 = vadd.f32 %v1592_v14, %v580_v52 }
  0xf0   : > { %vm607_vm12 = vcmp.gt.f32.partialorder %v581_v54, 0.0  ;;  %v623_v55 = vmul.f32 0.2, %v581_v54 }
  0xf2   : > { %v639_v57 = vsel %vm607_vm12, %v581_v54, %v623_v55 }
  0xf3   : > { %v650_v58 = vpack.c.bf16 %v639_v57, %v638_v56 }
  0xf5   : > { %v583_v59 = vpop.f32.mrf.mxu0  ;;  %1188 = vmatmul.msk.bf16.gmra.mxu1 %vm674_vm4, %v650_v58 }
  0xf6   : > { %v584_v60 = vadd.f32 %v1592_v14, %v583_v59 }
  0xf8   : > { %v624_v62 = vmul.f32 0.2, %v584_v60  ;;  %vm608_vm13 = vcmp.gt.f32.partialorder %v584_v60, 0.0 }
  0xfa   : > { %v640_v1 = vsel %vm608_vm13, %v584_v60, %v624_v62 }
  0xfd   : > { %v585_v61 = vpop.f32.mrf.mxu0 }
  0xfe   : > { %v586_v63 = vadd.f32 %v1592_v14, %v585_v61 }
 0x100   : > { %vm609_vm14 = vcmp.gt.f32.partialorder %v586_v63, 0.0  ;;  %v625_v0 = vmul.f32 0.2, %v586_v63 }
 0x102   : > { %v641_v2 = vsel %vm609_vm14, %v586_v63, %v625_v0 }
 0x103   : > { %v651_v3 = vpack.c.bf16 %v641_v2, %v640_v1 }
 0x105   : > { %v588_v4 = vpop.f32.mrf.mxu0  ;;  %1189 = vmatmul.msk.bf16.gmra.mxu1 %vm674_vm4, %v651_v3 }
 0x106   : > { %v589_v5 = vadd.f32 %v1592_v14, %v588_v4 }
 0x108   : > { %v626_v8 = vmul.f32 0.2, %v589_v5  ;;  %vm610_vm15 = vcmp.gt.f32.partialorder %v589_v5, 0.0 }
 0x10a   : > { %v642_v12 = vsel %vm610_vm15, %v589_v5, %v626_v8 }
 0x10d   : > { %v590_v7 = vpop.f32.mrf.mxu0 }
 0x10e   : > { %v591_v9 = vadd.f32 %v1592_v14, %v590_v7 }
 0x110   : > { %vm611_vm0 = vcmp.gt.f32.partialorder %v591_v9, 0.0  ;;  %v627_v10 = vmul.f32 0.2, %v591_v9 }
 0x112   : > { %v643_v13 = vsel %vm611_vm0, %v591_v9, %v627_v10 }
 0x113   : > { %v652_v15 = vpack.c.bf16 %v643_v13, %v642_v12 }
 0x115   : > { %1190 = vmatmul.msk.bf16.vlgmr.msrb.gmra.mxu3 %vm674_vm4, %v652_v15 }
 0x125   : > { %1191 = vmatmul.msk.bf16.gmra.mxu3 %vm674_vm4, %v653_v26 }
 0x132   : > { %v708_v14 = vpop.f32.mrf.mxu1 }
 0x133   : > { %v709_v28 = vadd.f32 %v1633_v27, %v708_v14 }
 0x135   : > { %v764_v30 = vmul.f32 0.2, %v709_v28  ;;  %vm748_vm3 = vcmp.gt.f32.partialorder %v709_v28, 0.0 }
 0x137   : > { %v780_v33 = vsel %vm748_vm3, %v709_v28, %v764_v30 }
 0x13a   : > { %v710_v29 = vpop.f32.mrf.mxu1 }
 0x13b   : > { %v711_v31 = vadd.f32 %v1633_v27, %v710_v29 }
 0x13d   : > { %vm749_vm5 = vcmp.gt.f32.partialorder %v711_v31, 0.0  ;;  %v765_v32 = vmul.f32 0.2, %v711_v31 }
 0x13f   : > { %v781_v34 = vsel %vm749_vm5, %v711_v31, %v765_v32 }
 0x140   : > { %v796_v35 = vpack.c.bf16 %v781_v34, %v780_v33 }
 0x142   : > { %v713_v36 = vpop.f32.mrf.mxu1  ;;  %1208 = vmatmul.msk.bf16.vlgmr.msra.gmra.mxu2 %vm840_vm6, %v796_v35 }
 0x143   : > { %v714_v37 = vadd.f32 %v1633_v27, %v713_v36 }
 0x145   : > { %v766_v39 = vmul.f32 0.2, %v714_v37  ;;  %vm750_vm4 = vcmp.gt.f32.partialorder %v714_v37, 0.0 }
 0x147   : > { %v782_v42 = vsel %vm750_vm4, %v714_v37, %v766_v39 }
 0x14a   : > { %v715_v38 = vpop.f32.mrf.mxu1 }
 0x14b   : > { %v716_v40 = vadd.f32 %v1633_v27, %v715_v38 }
 0x14d   : > { %vm751_vm7 = vcmp.gt.f32.partialorder %v716_v40, 0.0  ;;  %v767_v41 = vmul.f32 0.2, %v716_v40 }
 0x14f   : > { %v783_v43 = vsel %vm751_vm7, %v716_v40, %v767_v41 }
 0x150   : > { %v797_v44 = vpack.c.bf16 %v783_v43, %v782_v42 }
 0x152   : > { %v718_v45 = vpop.f32.mrf.mxu1  ;;  %1209 = vmatmul.msk.bf16.gmra.mxu2 %vm840_vm6, %v797_v44 }
 0x153   : > { %v719_v46 = vadd.f32 %v1633_v27, %v718_v45 }
 0x155   : > { %v768_v48 = vmul.f32 0.2, %v719_v46  ;;  %vm752_vm8 = vcmp.gt.f32.partialorder %v719_v46, 0.0 }
 0x157   : > { %v784_v51 = vsel %vm752_vm8, %v719_v46, %v768_v48 }
 0x15a   : > { %v720_v47 = vpop.f32.mrf.mxu1 }
 0x15b   : > { %v721_v49 = vadd.f32 %v1633_v27, %v720_v47 }
 0x15d   : > { %vm753_vm9 = vcmp.gt.f32.partialorder %v721_v49, 0.0  ;;  %v769_v50 = vmul.f32 0.2, %v721_v49 }
 0x15f   : > { %v785_v52 = vsel %vm753_vm9, %v721_v49, %v769_v50 }
 0x160   : > { %v798_v53 = vpack.c.bf16 %v785_v52, %v784_v51 }
 0x162   : > { %v723_v54 = vpop.f32.mrf.mxu1  ;;  %1210 = vmatmul.msk.bf16.gmra.mxu2 %vm840_vm6, %v798_v53 }
 0x163   : > { %v724_v55 = vadd.f32 %v1633_v27, %v723_v54 }
 0x165   : > { %v770_v57 = vmul.f32 0.2, %v724_v55  ;;  %vm754_vm10 = vcmp.gt.f32.partialorder %v724_v55, 0.0 }
 0x167   : > { %v786_v60 = vsel %vm754_vm10, %v724_v55, %v770_v57 }
 0x16a   : > { %v725_v56 = vpop.f32.mrf.mxu1 }
 0x16b   : > { %v726_v58 = vadd.f32 %v1633_v27, %v725_v56 }
 0x16d   : > { %vm755_vm11 = vcmp.gt.f32.partialorder %v726_v58, 0.0  ;;  %v771_v59 = vmul.f32 0.2, %v726_v58 }
 0x16f   : > { %v787_v61 = vsel %vm755_vm11, %v726_v58, %v771_v59 }
 0x170   : > { %v799_v62 = vpack.c.bf16 %v787_v61, %v786_v60 }
 0x172   : > { %v728_v63 = vpop.f32.mrf.mxu1  ;;  %1211 = vmatmul.msk.bf16.gmra.mxu2 %vm840_vm6, %v799_v62 }
 0x173   : > { %v729_v0 = vadd.f32 %v1633_v27, %v728_v63 }
 0x175   : > { %v772_v2 = vmul.f32 0.2, %v729_v0  ;;  %vm756_vm12 = vcmp.gt.f32.partialorder %v729_v0, 0.0 }
 0x177   : > { %v788_v5 = vsel %vm756_vm12, %v729_v0, %v772_v2 }
 0x17a   : > { %v730_v1 = vpop.f32.mrf.mxu1 }
 0x17b   : > { %v731_v3 = vadd.f32 %v1633_v27, %v730_v1 }
 0x17d   : > { %vm757_vm13 = vcmp.gt.f32.partialorder %v731_v3, 0.0  ;;  %v773_v4 = vmul.f32 0.2, %v731_v3 }
 0x17f   : > { %v789_v6 = vsel %vm757_vm13, %v731_v3, %v773_v4 }
 0x180   : > { %v800_v7 = vpack.c.bf16 %v789_v6, %v788_v5 }
 0x182   : > { %v733_v8 = vpop.f32.mrf.mxu1  ;;  %1212 = vmatmul.msk.bf16.gmra.mxu2 %vm840_vm6, %v800_v7 }
 0x183   : > { %v734_v9 = vadd.f32 %v1633_v27, %v733_v8 }
 0x185   : > { %v774_v11 = vmul.f32 0.2, %v734_v9  ;;  %vm758_vm14 = vcmp.gt.f32.partialorder %v734_v9, 0.0 }
 0x187   : > { %v790_v15 = vsel %vm758_vm14, %v734_v9, %v774_v11 }
 0x18a   : > { %v735_v10 = vpop.f32.mrf.mxu1 }
 0x18b   : > { %v736_v12 = vadd.f32 %v1633_v27, %v735_v10 }
 0x18d   : > { %vm759_vm15 = vcmp.gt.f32.partialorder %v736_v12, 0.0  ;;  %v775_v13 = vmul.f32 0.2, %v736_v12 }
 0x18f   : > { %v791_v16 = vsel %vm759_vm15, %v736_v12, %v775_v13 }
 0x190   : > { %v801_v17 = vpack.c.bf16 %v791_v16, %v790_v15 }
 0x192   : > { %1213 = vmatmul.msk.bf16.gmra.mxu2 %vm840_vm6, %v801_v17 }
 0x198   : > { %v738_v18 = vpop.f32.mrf.mxu3 }
 0x199   : > { %v739_v19 = vadd.f32 %v1633_v27, %v738_v18 }
 0x19b   : > { %v776_v21 = vmul.f32 0.2, %v739_v19  ;;  %vm760_vm0 = vcmp.gt.f32.partialorder %v739_v19, 0.0 }
 0x19d   : > { %v792_v24 = vsel %vm760_vm0, %v739_v19, %v776_v21 }
 0x1a0   : > { %v740_v20 = vpop.f32.mrf.mxu3 }
 0x1a1   : > { %v741_v22 = vadd.f32 %v1633_v27, %v740_v20 }
 0x1a3   : > { %vm761_vm1 = vcmp.gt.f32.partialorder %v741_v22, 0.0  ;;  %v777_v23 = vmul.f32 0.2, %v741_v22 }
 0x1a5   : > { %v793_v25 = vsel %vm761_vm1, %v741_v22, %v777_v23 }
 0x1a6   : > { %v802_v26 = vpack.c.bf16 %v793_v25, %v792_v24  ;;  %v914_v25 = vld [vmem:[#allocation2] sm:$0x1] }
 0x1a8   : > { %v743_v14 = vpop.f32.mrf.mxu3  ;;  %1214 = vmatmul.msk.bf16.vlgmr.msra.gmra.mxu3 %vm840_vm6, %v802_v26 }
 0x1a9   : > { %v744_v28 = vadd.f32 %v1633_v27, %v743_v14 }
 0x1ab   : > { %v778_v30 = vmul.f32 0.2, %v744_v28  ;;  %vm762_vm2 = vcmp.gt.f32.partialorder %v744_v28, 0.0 }
 0x1ad   : > { %v794_v33 = vsel %vm762_vm2, %v744_v28, %v778_v30 }
 0x1b0   : > { %v745_v29 = vpop.f32.mrf.mxu3 }
 0x1b1   : > { %v746_v31 = vadd.f32 %v1633_v27, %v745_v29  ;;  %v1317_v27 = vld [vmem:[%s1799_s6] ss:$0 sm:$0xff] }
 0x1b3   : > { %vm763_vm3 = vcmp.gt.f32.partialorder %v746_v31, 0.0  ;;  %v779_v32 = vmul.f32 0.2, %v746_v31 }
 0x1b5   : > { %v795_v34 = vsel %vm763_vm3, %v746_v31, %v779_v32 }
 0x1b6   : > { %v803_v35 = vpack.c.bf16 %v795_v34, %v794_v33 }
 0x1b8   : > { %1215 = vmatmul.msk.bf16.gmra.mxu3 %vm840_vm6, %v803_v35 }
 0x1c5   : > { %v874_v36 = vpop.f32.mrf.mxu2 }
 0x1c6   : > { %v875_v49 = vadd.f32 %v1317_v27, %v874_v36 }
 0x1cd   : > { %v876_v37 = vpop.f32.mrf.mxu2 }
 0x1ce   : > { %v877_v50 = vadd.f32 %v1317_v27, %v876_v37 }
 0x1d5   : > { %v879_v38 = vpop.f32.mrf.mxu2 }
 0x1d6   : > { %v880_v4 = vadd.f32 %v1317_v27, %v879_v38 }
 0x1dd   : > { %v881_v39 = vpop.f32.mrf.mxu2 }
 0x1de   : > { %v882_v5 = vadd.f32 %v1317_v27, %v881_v39 }
 0x1e5   : > { %v884_v40 = vpop.f32.mrf.mxu2 }
 0x1e6   : > { %v885_v47 = vadd.f32 %v1317_v27, %v884_v40 }
 0x1e8   : > { %v915_v53 = vmax.f32 %v875_v49, %v885_v47 }
 0x1ed   : > { %v886_v41 = vpop.f32.mrf.mxu2 }
 0x1ee   : > { %v887_v48 = vadd.f32 %v1317_v27, %v886_v41 }
 0x1f0   : > { %v916_v54 = vmax.f32 %v877_v50, %v887_v48 }
 0x1f5   : > { %v889_v42 = vpop.f32.mrf.mxu2 }
 0x1f6   : > { %v890_v2 = vadd.f32 %v1317_v27, %v889_v42 }
 0x1f8   : > { %v917_v8 = vmax.f32 %v880_v4, %v890_v2 }
 0x1fd   : > { %v891_v43 = vpop.f32.mrf.mxu2 }
 0x1fe   : > { %v892_v3 = vadd.f32 %v1317_v27, %v891_v43 }
 0x200   : > { %v918_v9 = vmax.f32 %v882_v5, %v892_v3 }
 0x205   : > { %v894_v44 = vpop.f32.mrf.mxu2 }
 0x206   : > { %v895_v51 = vadd.f32 %v1317_v27, %v894_v44 }
 0x208   : > { %v919_v58 = vmax.f32 %v915_v53, %v895_v51 }
 0x20d   : > { %v896_v45 = vpop.f32.mrf.mxu2 }
 0x20e   : > { %v897_v52 = vadd.f32 %v1317_v27, %v896_v45 }
 0x210   : > { %v920_v59 = vmax.f32 %v916_v54, %v897_v52 }
 0x215   : > { %v899_v56 = vpop.f32.mrf.mxu2 }
 0x216   : > { %v900_v6 = vadd.f32 %v1317_v27, %v899_v56 }
 0x218   : > { %v921_v12 = vmax.f32 %v917_v8, %v900_v6 }
 0x21d   : > { %v901_v1 = vpop.f32.mrf.mxu2 }
 0x21e   : > { %v902_v7 = vadd.f32 %v1317_v27, %v901_v1 }
 0x220   : > { %v922_v13 = vmax.f32 %v918_v9, %v902_v7 }
 0x22b   : > { %v904_v46 = vpop.f32.mrf.mxu3 }
 0x22c   : > { %v905_v55 = vadd.f32 %v1317_v27, %v904_v46 }
 0x22e   : > { %v923_v61 = vmax.f32 %v919_v58, %v905_v55 }
 0x233   : > { %v906_v57 = vpop.f32.mrf.mxu3 }
 0x234   : > { %v907_v60 = vadd.f32 %v1317_v27, %v906_v57 }
 0x236   : > { %v924_v62 = vmax.f32 %v920_v59, %v907_v60 }
 0x238   : > { %v927_v63 = vmax.f32 %v923_v61, %v924_v62 }
 0x23b   : > { %v909_v0 = vpop.f32.mrf.mxu3 }
 0x23c   : > { %v910_v10 = vadd.f32 %v1317_v27, %v909_v0 }
 0x23e   : > { %v925_v16 = vmax.f32 %v921_v12, %v910_v10 }
 0x243   : > { %v911_v11 = vpop.f32.mrf.mxu3 }
 0x244   : > { %v912_v15 = vadd.f32 %v1317_v27, %v911_v11 }
 0x246   : > { %v926_v17 = vmax.f32 %v922_v13, %v912_v15 }
 0x248   : > { %v928_v18 = vmax.f32 %v925_v16, %v926_v17 }
 0x24a   : > { %v929_v19 = vmax.f32 %v927_v63, %v928_v18 }
 0x24c   : > { %v930_v20 = vrot.slane %v929_v19, 4 }
 0x24e   : > { %v931_v21 = vmax.f32 %v929_v19, %v930_v20 }
 0x250   : > { %v932_v22 = vrot.slane %v931_v21, 2 }
 0x252   : > { %v933_v23 = vmax.f32 %v931_v21, %v932_v22 }
 0x254   : > { %v934_v24 = vrot.slane %v933_v23, 1 }
 0x256   : > { %v935_v26 = vmax.f32 %v933_v23, %v934_v24  ;;  %941 = sbr.rel (%p1216_p1) target bundleno = 1030 (0x406), region = 76 }
 0x258   : > { %v936_v14 = vmax.f32 %v914_v25, %v935_v26 }
 0x25a   : > { %937 = vst [vmem:[#allocation2] sm:$0x1] %v936_v14 }
 0x25b   : > { %v958_v28 = vld [vmem:[%s1800_s7 + $0x78] sm:$0xff]  ;;  %v957_v29 = vld [vmem:[%s1800_s7 + $0x70] sm:$0xff]  ;;  %v956_v30 = vld [vmem:[%s1800_s7 + $0x68] sm:$0xff]  ;;  %vm1031_vm4 = vcmask 385024  }
 0x25c   : > { %960 = vmatpush.msra.mxu0 %v958_v28  ;;  %v955_v31 = vld [vmem:[%s1800_s7 + $0x60] sm:$0xff]  ;;  %v990_v32 = vld [vmem:[%s1802_s9 + $0x38] sm:$0xff]  ;;  %v989_v34 = vld [vmem:[%s1802_s9 + $0x30] sm:$0xff] }
 0x25d   : > { %v954_v33 = vld [vmem:[%s1800_s7 + $0x58] sm:$0xff]  ;;  %1003 = vmatpush.msra.mxu1 %v990_v32  ;;  %v988_v35 = vld [vmem:[%s1802_s9 + $0x28] sm:$0xff]  ;;  %v953_v36 = vld [vmem:[%s1800_s7 + $0x50] sm:$0xff] }
 0x25e   : > { %961 = vmatpush.msra.mxu0 %v957_v29  ;;  %v987_v37 = vld [vmem:[%s1802_s9 + $0x20] sm:$0xff]  ;;  %v952_v38 = vld [vmem:[%s1800_s7 + $0x48] sm:$0xff]  ;;  %v986_v39 = vld [vmem:[%s1802_s9 + $0x18] sm:$0xff] }
 0x25f   : > { %1004 = vmatpush.msra.mxu1 %v989_v34  ;;  %v951_v40 = vld [vmem:[%s1800_s7 + $0x40] sm:$0xff]  ;;  %v950_v41 = vld [vmem:[%s1800_s7 + $0x38] sm:$0xff]  ;;  %v949_v42 = vld [vmem:[%s1800_s7 + $0x30] sm:$0xff] }
 0x260   : > { %962 = vmatpush.msra.mxu0 %v956_v30  ;;  %v948_v43 = vld [vmem:[%s1800_s7 + $0x28] sm:$0xff]  ;;  %v947_v44 = vld [vmem:[%s1800_s7 + $0x20] sm:$0xff]  ;;  %v946_v45 = vld [vmem:[%s1800_s7 + $0x18] sm:$0xff] }
 0x261   : > { %1005 = vmatpush.msra.mxu1 %v988_v35  ;;  %v945_v46 = vld [vmem:[%s1800_s7 + $0x10] sm:$0xff]  ;;  %v944_v27 = vld [vmem:[%s1800_s7 + $0x8] sm:$0xff]  ;;  %v943_v47 = vld [vmem:[%s1800_s7] sm:$0xff] }
 0x262   : > { %963 = vmatpush.msra.mxu0 %v955_v31  ;;  %v942_v48 = vld [vmem:[#allocation2] sm:$0x1]  ;;  %v985_v49 = vld [vmem:[%s1802_s9 + $0x10] sm:$0xff]  ;;  %v984_v50 = vld [vmem:[%s1802_s9 + $0x8] sm:$0xff] }
 0x263   : > { %1006 = vmatpush.msra.mxu1 %v987_v37  ;;  %v983_v51 = vld [vmem:[%s1802_s9] sm:$0xff] }
 0x264   : > { %964 = vmatpush.msra.mxu0 %v954_v33  ;;  %v959_v52 = vld [vmem:[%s1801_s8] sm:$0x1] }
 0x265   : > { %1007 = vmatpush.msra.mxu1 %v986_v39  ;;  %v991_v57 = vld [vmem:[%s1803_s10] sm:$0x1] }
 0x266   : > { %965 = vmatpush.msra.mxu0 %v953_v36  ;;  %v1015_v63 = vld [vmem:[%s452_s18] sm:$0x1] }
 0x267   : > { %1008 = vmatpush.msra.mxu1 %v985_v49 }
 0x268   : > { %966 = vmatpush.msra.mxu0 %v952_v38 }
 0x269   : > { %1009 = vmatpush.msra.mxu1 %v984_v50 }
 0x26a   : > { %967 = vmatpush.msra.mxu0 %v951_v40 }
 0x26b   : > { %1010 = vmatpush.msra.mxu1 %v983_v51 }
 0x26c   : > { %968 = vmatpush.msra.mxu0 %v950_v41 }
 0x26e   : > { %969 = vmatpush.msra.mxu0 %v949_v42 }
 0x270   : > { %970 = vmatpush.msra.mxu0 %v948_v43 }
 0x272   : > { %971 = vmatpush.msra.mxu0 %v947_v44 }
 0x274   : > { %972 = vmatpush.msra.mxu0 %v946_v45 }
 0x276   : > { %973 = vmatpush.msra.mxu0 %v945_v46 }
 0x278   : > { %974 = vmatpush.msra.mxu0 %v944_v27 }
 0x27a   : > { %975 = vmatpush.msra.mxu0 %v943_v47 }
 0x27b   : > { %976 = vmatmul.f32.vlgmr.msra.gmra.mxu0 %v942_v48 }
 0x2f8   : > { %v977_v53 = vpop.f32.mrf.mxu0 }
 0x2f9   : > { %v978_v54 = vadd.f32 %v977_v53, %v959_v52 }
 0x2fb   : > { %vm980_vm5 = vcmp.gt.f32.partialorder %v978_v54, 0.0  ;;  %v981_v55 = vmul.f32 0.2, %v978_v54 }
 0x2fd   : > { %v982_v56 = vsel %vm980_vm5, %v978_v54, %v981_v55 }
 0x2fe   : > { %1217 = vmatmul.msk.f32.vlgmr.msra.gmra.mxu1 %vm840_vm6, %v982_v56  ;;  %vm1029_vm6 = vcmask 130048  }
 0x37b   : > { %v1012_v58 = vpop.f32.mrf.mxu1 }
 0x37c   : > { %v1013_v59 = vadd.f32 %v1012_v58, %v991_v57 }
 0x37e   : > { %v1016_v60 = vmul.f32 0.5, %v1013_v59 }
 0x380   : > { %v1017_v61 = vmul.f32 1.442695, %v1016_v60 }
 0x382   : > { %1318 = vpow2.f32 %v1017_v61 }
 0x388   : > { %v1319_v62 = vpop.eup %1318 }
 0x389   : > { %1020 = vrot.lane.b32.xlu0 %v1319_v62, %s1417_s23 }
 0x391   : > { %1026 = vrot.lane.b32.xlu0 %v1013_v59, %s1418_s26 }
 0x3fb   : > { %v1021_v0 = vpop.permute.xlu0 %1020 }
 0x3fc   : > { %v1023_v1 = vmul.f32 %v1021_v0, %v1015_v63 }
 0x3fe   : > { %v1024_v2 = vadd.f32 %v1023_v1, %v1013_v59 }
 0x403   : > { %v1027_v3 = vpop.permute.xlu0 %1026 }
 0x404   : > { %v1030_v4 = vsel %vm1029_vm6, %v1024_v2, %v1027_v3 }
 0x405   : > { %1032 = vst.msk [vmem:[%s1569_s21] sm:$0x1] %vm1031_vm4, %v1030_v4 }
 0x406 PF: > { %s1042_s15 = scalar_lea.hbm %s1805_s12, %s1402_s25  ;;  %s1044_s16 = sshll.u32 %s1569_s21, 4  ;;  %s1045_s16 = int_to_ptr.vmem [resolvable:$true] %s1044_s16 }
 0x407   : > { %s1046_s30 = sshll.u32 %s1042_s15, 4  ;;  %s1034_s18 = scalar_lea.sflag [#allocation4], %s438_s20  ;;  %s1047_s30 = int_to_ptr.hbm [resolvable:$true] %s1046_s30 }
 0x408   : > { %s1334_s19 = sshra.s32 %s1047_s30, 4  ;;  %s1340_s26 = scalar_lea.hbm %s1805_s12, 2  ;;  %s1335_s19 = int_to_ptr.hbm [resolvable:$true] %s1334_s19 }
 0x409   : > { %s1336_s29 = scalar_lea.hbm %s1335_s19, 1  ;;  %p1341_p6 = scmp.lt.s32.totalorder %s1335_s19, %s1805_s12 }
 0x40a   : > { %p1337_p2 = scmp.ne.s32.totalorder %s1335_s19, %s1336_s29  ;;  %p1342_p7 = scmp.lt.s32.totalorder %s1340_s26, %s1336_s29 }
 0x40c   : > { %p1338_p4 = pnand %p1337_p2, %p1533_p3  ;;  %p1343_p8 = por %p1342_p7, %p1341_p6 }
 0x40e   : > { %p1339_p5 = pneg %p1338_p4 }
 0x410   : > { %p1344_p10 = pnand %p1343_p8, %p1339_p5 }
 0x412   : > { %1347 = shalt.err (!%p1344_p10)
}
 0x413   : > { %1241 = dma.vmem_to_hbm [thread:$0]  (%p1533_p3), %s1045_s16, 16, %s1047_s30, %s1034_s18  }
 0x414 PF: > { %s1829_s21 = sld [smem:[#allocation10_spill]] }
 0x415   : > { %s1830_s25 = sld [smem:[#allocation6_spill]] }
 0x41a   : > { %p1247_p11 = scmp.ge.s32.totalorder %s1829_s21, 2 }
 0x41b   : > { %s1058_s24 = sand.u32 1, %s1830_s25  }
 0x41c   : > { %p1244_p12 = pnand %p1247_p11, %p1543_p9  ;;  %s1059_s13 = scalar_lea.sflag [#allocation4], %s1058_s24 }
 0x41e   : > { %p1245_p13 = pneg %p1244_p12 }
 0x420   : > { %1381 = dma.done.wait (%p1245_p13), %s1059_s13, 16  }
 0x421   : > { %1383 = vsyncadd (%p1245_p13), %s1059_s13, 4294967280  ;;  %s25_s28 = sadd.s32 1, %s1829_s21   ;;  %s1832_s15 = sld [smem:[#allocation7_spill]] }
 0x422   : > { %p22_p0 = scmp.ge.s32.totalorder %s25_s28, 10   ;;  %s1833_s23 = sld [smem:[#allocation15_spill]] }
 0x423   : > { %s1834_s24 = sld [smem:[#allocation8_spill]]  ;;  %s1838_s21 = smov %s1390_s22 }
 0x424   : > { %s1835_s25 = sld [smem:[#allocation9_spill]]  ;;  %24 = sbr.rel (!%p22_p0) target bundleno = 5 (0x5), region = 114 }
 0x425   : > { %s1836_s26 = sld [smem:[#allocation11_spill]] }
 0x426   : > { %s1837_s27 = sld [smem:[#allocation13_spill]] }
 0x427   : > { %s1839_s22 = smov %s1832_s15 }
 0x429   :  { %1064 = vsyncpa [#allocation4], 1 }
 0x42a   :  { %1066 = vsyncpa [#allocation4 + $0x1], 1 }

</bundles_post_ra>
